<compile_context>
chip_gen: v5e
topology: v5e:2x2
jax: 0.10.0
libtpu: 0.0.40
codegen_flags: <defaults>
</compile_context>

<pallas_src>
import jax
import jax.numpy as jnp
from jax.experimental import pallas as pl
from jax.experimental.pallas import tpu as pltpu


def _round_up(x, m):
    return (x + m - 1) // m * m


def _vmem_bytes(shape, itemsize):
    """Rough VMEM footprint of a buffer: last two dims padded to (8, 128)."""
    if len(shape) == 1:
        shape = (1,) + tuple(shape)
    lead = 1
    for d in shape[:-2]:
        lead *= int(d)
    return lead * _round_up(int(shape[-2]), 8) * _round_up(int(shape[-1]), 128) * itemsize


def _make_kernel(tile_n, C, W, KH, KW, Hout, Wout, Cout, L):
    def kernel(x_ref, w_ref, b_ref, o_ref):
        # x_ref: (tile_n, C, H*W) f32   -- NCHW image(s), spatial flattened
        # w_ref: (KH*KW, Cout, C) f32   -- per-tap weight matrices (real channels)
        # b_ref: (Cout, 1)        f32   -- bias with the t-channel folded in
        # o_ref: (tile_n, Hout, Cout, Wout)
        b = b_ref[...]
        for i in range(tile_n):                        # static unroll over images
            acc = jnp.zeros((Cout, L), jnp.float32)
            for kh in range(KH):                       # fused im2col: shifted taps
                for kw in range(KW):
                    d = kh * W + kw
                    xs = x_ref[i, :, d:d + L]          # (C, L) lane-shifted view
                    acc = acc + jnp.dot(w_ref[kh * KW + kw], xs,
                                        preferred_element_type=jnp.float32)
            acc = acc + b
            # Valid output columns of row ho live at lanes [ho*W, ho*W + Wout).
            for ho in range(Hout):
                o_ref[i, ho, :, :] = acc[:, ho * W: ho * W + Wout].astype(o_ref.dtype)
            # TODO(synk): for very large Hout this static unroll should become a
            # dynamic loop to bound code size.
    return kernel


def concat_conv2d(t, x, weight, bias, *, tile_n=8):
    """ConcatConv2d forward: Conv2d(C+1, Cout, 3, padding=0)(cat([t*ones, x], 1))."""
    N, C, H, W = x.shape
    Cout, Cin1, KH, KW = weight.shape
    assert Cin1 == C + 1
    # TODO(synk): only the module defaults (stride=1, padding=0, dilation=1,
    # groups=1, transpose=False) are implemented.

    Hout = H - KH + 1
    Wout = W - KW + 1
    S = H * W
    L = (Hout - 1) * W + Wout        # spatial span touched by one (kh, kw) tap

    # Fold the constant t-channel into the bias (exact while t is a scalar).
    # TODO(synk): per-sample / per-pixel t would need the channel materialized.
    bias_eff = bias.astype(jnp.float32) + jnp.asarray(t, jnp.float32) * \
        weight[:, 0].astype(jnp.float32).sum(axis=(1, 2))
    b_mat = bias_eff.reshape(Cout, 1)

    # Per-tap (Cout, C) weight matrices over the real channels, (kh, kw)-major.
    w_taps = jnp.transpose(weight[:, 1:], (2, 3, 0, 1)).reshape(KH * KW, Cout, C)
    w_taps = w_taps.astype(jnp.float32)

    # NCHW consumed directly; flattening the spatial dims is a free view.
    x_flat = x.reshape(N, C, S)

    # --- tile_n / VMEM budget ---------------------------------------------
    itemsize = 4
    tile_n = max(1, min(tile_n, int(pl.cdiv(N, 2))))   # >= 2 grid steps when N >= 2

    def footprint(tn):
        return (2 * _vmem_bytes((tn, C, S), itemsize)              # in, double-buffered
                + 2 * _vmem_bytes((tn, Hout, Cout, Wout), itemsize)  # out, double-buffered
                + _vmem_bytes((KH * KW, Cout, C), itemsize)
                + _vmem_bytes((Cout, 1), itemsize))

    vmem_budget = 40 * 1024 * 1024   # safe on v7x (64 MiB/TC); ample on v5e/v6e
    while tile_n > 1 and footprint(tile_n) > vmem_budget:
        tile_n //= 2
    vmem_limit = int(max(16 * 1024 * 1024,
                         min(96 * 1024 * 1024, footprint(tile_n) + (8 << 20))))

    n_pad = _round_up(N, tile_n)
    if n_pad != N:
        x_flat = jnp.pad(x_flat, ((0, n_pad - N), (0, 0), (0, 0)))

    grid = (n_pad // tile_n,)
    kernel = _make_kernel(tile_n, C, W, KH, KW, Hout, Wout, Cout, L)

    cost = pl.CostEstimate(
        flops=2 * N * Hout * Wout * KH * KW * C * Cout,
        transcendentals=0,
        bytes_accessed=(x.size + w_taps.size + b_mat.size
                        + N * Hout * Cout * Wout) * itemsize,
    )

    out = pl.pallas_call(
        kernel,
        out_shape=jax.ShapeDtypeStruct((n_pad, Hout, Cout, Wout), x.dtype),
        grid_spec=pltpu.PrefetchScalarGridSpec(
            num_scalar_prefetch=0,
            grid=grid,
            in_specs=[
                pl.BlockSpec((tile_n, C, S), lambda n: (n, 0, 0)),
                pl.BlockSpec((KH * KW, Cout, C), lambda n: (0, 0, 0)),
                pl.BlockSpec((Cout, 1), lambda n: (0, 0)),
            ],
            out_specs=pl.BlockSpec((tile_n, Hout, Cout, Wout),
                                   lambda n: (n, 0, 0, 0)),
        ),
        compiler_params=pltpu.CompilerParams(
            dimension_semantics=("parallel",),
            vmem_limit_bytes=vmem_limit,
        ),
        cost_estimate=cost,
    )(x_flat, w_taps, b_mat)

    out = out[:N]                                   # drop batch padding, if any
    # Exact-size (N, Hout, Cout, Wout) -> NCHW; the only epilogue pass.
    # TODO(synk): a channels-last consumer could take `out` as-is and skip this.
    return jnp.transpose(out, (0, 2, 1, 3))


if __name__ == "__main__":
    key = jax.random.PRNGKey(0)
    kx, kw_, kb = jax.random.split(key, 3)

    batch, dim_in, dim_out, hw, ksize = 2, 4, 8, 16, 3
    x = jax.random.normal(kx, (batch, dim_in, hw, hw), dtype=jnp.float32)
    t = jnp.float32(0.5)

    # Deterministic params for Conv2d(dim_in + 1, dim_out, 3, bias=True).
    fan_in = (dim_in + 1) * ksize * ksize
    bound = 1.0 / float(fan_in) ** 0.5
    weight = jax.random.uniform(kw_, (dim_out, dim_in + 1, ksize, ksize),
                                dtype=jnp.float32, minval=-bound, maxval=bound)
    bias = jax.random.uniform(kb, (dim_out,), dtype=jnp.float32,
                              minval=-bound, maxval=bound)

    out = jax.jit(concat_conv2d)(t, x, weight, bias)
    out = jax.block_until_ready(out)

    # Reference check (same semantics as torch.nn.Conv2d with padding=0), f32.
    tt = jnp.ones_like(x[:, :1, :, :]) * t
    ttx = jnp.concatenate([tt, x], axis=1)
    ref = jax.lax.conv_general_dilated(
        ttx, weight, window_strides=(1, 1), padding="VALID",
        dimension_numbers=("NCHW", "OIHW", "NCHW"),
        precision=jax.lax.Precision.HIGHEST) + bias[None, :, None, None]

    assert out.shape == (batch, dim_out, hw - ksize + 1, hw - ksize + 1)
    assert jnp.allclose(out, ref, atol=2e-2, rtol=2e-2), \
        float(jnp.max(jnp.abs(out - ref)))
    print("KERNEL_OK")
</pallas_src>

<mosaic_0001>
module attributes {stable_mosaic.version = 11 : i64} {
  func.func @kernel(%arg0: i32, %arg1: memref<1x4x256xf32, #tpu.memory_space<vmem>>, %arg2: memref<9x8x4xf32, #tpu.memory_space<vmem>>, %arg3: memref<8x1xf32, #tpu.memory_space<vmem>>, %arg4: memref<1x14x8x14xf32, #tpu.memory_space<vmem>>) attributes {dimension_semantics = [#tpu.dimension_semantics<parallel>], iteration_bounds = array<i64: 2>, scalar_prefetch = 0 : i64, scratch_operands = 0 : i64, tpu.core_type = #tpu.core_type<tc>, window_params = [{transform_indices = @transform_0, window_bounds = array<i64: 1, 4, 256>}, {pipeline_mode = #tpu.pipeline_mode<synchronous>, transform_indices = @transform_1, window_bounds = array<i64: 9, 8, 4>}, {pipeline_mode = #tpu.pipeline_mode<synchronous>, transform_indices = @transform_2, window_bounds = array<i64: 8, 1>}, {transform_indices = @transform_3, window_bounds = array<i64: 1, 14, 8, 14>}]} {
    %c0 = arith.constant 0 : index
    %c0_0 = arith.constant 0 : index
    %0 = vector.load %arg3[%c0, %c0_0] : memref<8x1xf32, #tpu.memory_space<vmem>>, vector<8x1xf32>
    %cst = arith.constant 0.000000e+00 : f32
    %1 = vector.broadcast %cst : f32 to vector<8x222xf32>
    %c0_1 = arith.constant 0 : index
    %c0_2 = arith.constant 0 : index
    %c0_3 = arith.constant 0 : index
    %2 = vector.load %arg1[%c0_1, %c0_2, %c0_3] : memref<1x4x256xf32, #tpu.memory_space<vmem>>, vector<1x4x222xf32>
    %3 = vector.shape_cast %2 : vector<1x4x222xf32> to vector<4x222xf32>
    %c0_4 = arith.constant 0 : index
    %c0_5 = arith.constant 0 : index
    %c0_6 = arith.constant 0 : index
    %4 = vector.load %arg2[%c0_4, %c0_5, %c0_6] : memref<9x8x4xf32, #tpu.memory_space<vmem>>, vector<1x8x4xf32>
    %5 = vector.shape_cast %4 : vector<1x8x4xf32> to vector<8x4xf32>
    %cst_7 = arith.constant dense<0.000000e+00> : vector<8x222xf32>
    %6 = tpu.matmul %5, %3, %cst_7 {dimension_numbers = #tpu.dot_dimension_numbers<[1], [0], [0], [1], [0, 0, 1, 1], [], []>} : vector<8x4xf32>, vector<4x222xf32>, vector<8x222xf32> -> vector<8x222xf32>
    %7 = arith.addf %1, %6 : vector<8x222xf32>
    %c0_8 = arith.constant 0 : index
    %c0_9 = arith.constant 0 : index
    %c1 = arith.constant 1 : index
    %8 = vector.load %arg1[%c0_8, %c0_9, %c1] : memref<1x4x256xf32, #tpu.memory_space<vmem>>, vector<1x4x222xf32>
    %9 = vector.shape_cast %8 : vector<1x4x222xf32> to vector<4x222xf32>
    %c1_10 = arith.constant 1 : index
    %c0_11 = arith.constant 0 : index
    %c0_12 = arith.constant 0 : index
    %10 = vector.load %arg2[%c1_10, %c0_11, %c0_12] : memref<9x8x4xf32, #tpu.memory_space<vmem>>, vector<1x8x4xf32>
    %11 = vector.shape_cast %10 : vector<1x8x4xf32> to vector<8x4xf32>
    %cst_13 = arith.constant dense<0.000000e+00> : vector<8x222xf32>
    %12 = tpu.matmul %11, %9, %cst_13 {dimension_numbers = #tpu.dot_dimension_numbers<[1], [0], [0], [1], [0, 0, 1, 1], [], []>} : vector<8x4xf32>, vector<4x222xf32>, vector<8x222xf32> -> vector<8x222xf32>
    %13 = arith.addf %7, %12 : vector<8x222xf32>
    %c0_14 = arith.constant 0 : index
    %c0_15 = arith.constant 0 : index
    %c2 = arith.constant 2 : index
    %14 = vector.load %arg1[%c0_14, %c0_15, %c2] : memref<1x4x256xf32, #tpu.memory_space<vmem>>, vector<1x4x222xf32>
    %15 = vector.shape_cast %14 : vector<1x4x222xf32> to vector<4x222xf32>
    %c2_16 = arith.constant 2 : index
    %c0_17 = arith.constant 0 : index
    %c0_18 = arith.constant 0 : index
    %16 = vector.load %arg2[%c2_16, %c0_17, %c0_18] : memref<9x8x4xf32, #tpu.memory_space<vmem>>, vector<1x8x4xf32>
    %17 = vector.shape_cast %16 : vector<1x8x4xf32> to vector<8x4xf32>
    %cst_19 = arith.constant dense<0.000000e+00> : vector<8x222xf32>
    %18 = tpu.matmul %17, %15, %cst_19 {dimension_numbers = #tpu.dot_dimension_numbers<[1], [0], [0], [1], [0, 0, 1, 1], [], []>} : vector<8x4xf32>, vector<4x222xf32>, vector<8x222xf32> -> vector<8x222xf32>
    %19 = arith.addf %13, %18 : vector<8x222xf32>
    %c0_20 = arith.constant 0 : index
    %c0_21 = arith.constant 0 : index
    %c16 = arith.constant 16 : index
    %20 = vector.load %arg1[%c0_20, %c0_21, %c16] : memref<1x4x256xf32, #tpu.memory_space<vmem>>, vector<1x4x222xf32>
    %21 = vector.shape_cast %20 : vector<1x4x222xf32> to vector<4x222xf32>
    %c3 = arith.constant 3 : index
    %c0_22 = arith.constant 0 : index
    %c0_23 = arith.constant 0 : index
    %22 = vector.load %arg2[%c3, %c0_22, %c0_23] : memref<9x8x4xf32, #tpu.memory_space<vmem>>, vector<1x8x4xf32>
    %23 = vector.shape_cast %22 : vector<1x8x4xf32> to vector<8x4xf32>
    %cst_24 = arith.constant dense<0.000000e+00> : vector<8x222xf32>
    %24 = tpu.matmul %23, %21, %cst_24 {dimension_numbers = #tpu.dot_dimension_numbers<[1], [0], [0], [1], [0, 0, 1, 1], [], []>} : vector<8x4xf32>, vector<4x222xf32>, vector<8x222xf32> -> vector<8x222xf32>
    %25 = arith.addf %19, %24 : vector<8x222xf32>
    %c0_25 = arith.constant 0 : index
    %c0_26 = arith.constant 0 : index
    %c17 = arith.constant 17 : index
    %26 = vector.load %arg1[%c0_25, %c0_26, %c17] : memref<1x4x256xf32, #tpu.memory_space<vmem>>, vector<1x4x222xf32>
    %27 = vector.shape_cast %26 : vector<1x4x222xf32> to vector<4x222xf32>
    %c4 = arith.constant 4 : index
    %c0_27 = arith.constant 0 : index
    %c0_28 = arith.constant 0 : index
    %28 = vector.load %arg2[%c4, %c0_27, %c0_28] : memref<9x8x4xf32, #tpu.memory_space<vmem>>, vector<1x8x4xf32>
    %29 = vector.shape_cast %28 : vector<1x8x4xf32> to vector<8x4xf32>
    %cst_29 = arith.constant dense<0.000000e+00> : vector<8x222xf32>
    %30 = tpu.matmul %29, %27, %cst_29 {dimension_numbers = #tpu.dot_dimension_numbers<[1], [0], [0], [1], [0, 0, 1, 1], [], []>} : vector<8x4xf32>, vector<4x222xf32>, vector<8x222xf32> -> vector<8x222xf32>
    %31 = arith.addf %25, %30 : vector<8x222xf32>
    %c0_30 = arith.constant 0 : index
    %c0_31 = arith.constant 0 : index
    %c18 = arith.constant 18 : index
    %32 = vector.load %arg1[%c0_30, %c0_31, %c18] : memref<1x4x256xf32, #tpu.memory_space<vmem>>, vector<1x4x222xf32>
    %33 = vector.shape_cast %32 : vector<1x4x222xf32> to vector<4x222xf32>
    %c5 = arith.constant 5 : index
    %c0_32 = arith.constant 0 : index
    %c0_33 = arith.constant 0 : index
    %34 = vector.load %arg2[%c5, %c0_32, %c0_33] : memref<9x8x4xf32, #tpu.memory_space<vmem>>, vector<1x8x4xf32>
    %35 = vector.shape_cast %34 : vector<1x8x4xf32> to vector<8x4xf32>
    %cst_34 = arith.constant dense<0.000000e+00> : vector<8x222xf32>
    %36 = tpu.matmul %35, %33, %cst_34 {dimension_numbers = #tpu.dot_dimension_numbers<[1], [0], [0], [1], [0, 0, 1, 1], [], []>} : vector<8x4xf32>, vector<4x222xf32>, vector<8x222xf32> -> vector<8x222xf32>
    %37 = arith.addf %31, %36 : vector<8x222xf32>
    %c0_35 = arith.constant 0 : index
    %c0_36 = arith.constant 0 : index
    %c32 = arith.constant 32 : index
    %38 = vector.load %arg1[%c0_35, %c0_36, %c32] : memref<1x4x256xf32, #tpu.memory_space<vmem>>, vector<1x4x222xf32>
    %39 = vector.shape_cast %38 : vector<1x4x222xf32> to vector<4x222xf32>
    %c6 = arith.constant 6 : index
    %c0_37 = arith.constant 0 : index
    %c0_38 = arith.constant 0 : index
    %40 = vector.load %arg2[%c6, %c0_37, %c0_38] : memref<9x8x4xf32, #tpu.memory_space<vmem>>, vector<1x8x4xf32>
    %41 = vector.shape_cast %40 : vector<1x8x4xf32> to vector<8x4xf32>
    %cst_39 = arith.constant dense<0.000000e+00> : vector<8x222xf32>
    %42 = tpu.matmul %41, %39, %cst_39 {dimension_numbers = #tpu.dot_dimension_numbers<[1], [0], [0], [1], [0, 0, 1, 1], [], []>} : vector<8x4xf32>, vector<4x222xf32>, vector<8x222xf32> -> vector<8x222xf32>
    %43 = arith.addf %37, %42 : vector<8x222xf32>
    %c0_40 = arith.constant 0 : index
    %c0_41 = arith.constant 0 : index
    %c33 = arith.constant 33 : index
    %44 = vector.load %arg1[%c0_40, %c0_41, %c33] : memref<1x4x256xf32, #tpu.memory_space<vmem>>, vector<1x4x222xf32>
    %45 = vector.shape_cast %44 : vector<1x4x222xf32> to vector<4x222xf32>
    %c7 = arith.constant 7 : index
    %c0_42 = arith.constant 0 : index
    %c0_43 = arith.constant 0 : index
    %46 = vector.load %arg2[%c7, %c0_42, %c0_43] : memref<9x8x4xf32, #tpu.memory_space<vmem>>, vector<1x8x4xf32>
    %47 = vector.shape_cast %46 : vector<1x8x4xf32> to vector<8x4xf32>
    %cst_44 = arith.constant dense<0.000000e+00> : vector<8x222xf32>
    %48 = tpu.matmul %47, %45, %cst_44 {dimension_numbers = #tpu.dot_dimension_numbers<[1], [0], [0], [1], [0, 0, 1, 1], [], []>} : vector<8x4xf32>, vector<4x222xf32>, vector<8x222xf32> -> vector<8x222xf32>
    %49 = arith.addf %43, %48 : vector<8x222xf32>
    %c0_45 = arith.constant 0 : index
    %c0_46 = arith.constant 0 : index
    %c34 = arith.constant 34 : index
    %50 = vector.load %arg1[%c0_45, %c0_46, %c34] : memref<1x4x256xf32, #tpu.memory_space<vmem>>, vector<1x4x222xf32>
    %51 = vector.shape_cast %50 : vector<1x4x222xf32> to vector<4x222xf32>
    %c8 = arith.constant 8 : index
    %c0_47 = arith.constant 0 : index
    %c0_48 = arith.constant 0 : index
    %52 = vector.load %arg2[%c8, %c0_47, %c0_48] : memref<9x8x4xf32, #tpu.memory_space<vmem>>, vector<1x8x4xf32>
    %53 = vector.shape_cast %52 : vector<1x8x4xf32> to vector<8x4xf32>
    %cst_49 = arith.constant dense<0.000000e+00> : vector<8x222xf32>
    %54 = tpu.matmul %53, %51, %cst_49 {dimension_numbers = #tpu.dot_dimension_numbers<[1], [0], [0], [1], [0, 0, 1, 1], [], []>} : vector<8x4xf32>, vector<4x222xf32>, vector<8x222xf32> -> vector<8x222xf32>
    %55 = arith.addf %49, %54 : vector<8x222xf32>
    %56 = vector.broadcast %0 : vector<8x1xf32> to vector<8x222xf32>
    %57 = arith.addf %55, %56 : vector<8x222xf32>
    %58 = vector.extract_strided_slice %57 {offsets = [0, 0], sizes = [8, 14], strides = [1, 1]} : vector<8x222xf32> to vector<8x14xf32>
    %c0_50 = arith.constant 0 : index
    %c0_51 = arith.constant 0 : index
    %c0_52 = arith.constant 0 : index
    %c0_53 = arith.constant 0 : index
    %59 = vector.load %arg4[%c0_50, %c0_51, %c0_52, %c0_53] : memref<1x14x8x14xf32, #tpu.memory_space<vmem>>, vector<1x1x8x14xf32>
    %60 = vector.shape_cast %59 : vector<1x1x8x14xf32> to vector<8x14xf32>
    %61 = vector.shape_cast %58 : vector<8x14xf32> to vector<1x1x8x14xf32>
    tpu.vector_store %arg4[%c0_50, %c0_51, %c0_52, %c0_53], %61 {strides = array<i32>} : memref<1x14x8x14xf32, #tpu.memory_space<vmem>>, vector<1x1x8x14xf32>,
    %62 = vector.extract_strided_slice %57 {offsets = [0, 16], sizes = [8, 14], strides = [1, 1]} : vector<8x222xf32> to vector<8x14xf32>
    %c0_54 = arith.constant 0 : index
    %c1_55 = arith.constant 1 : index
    %c0_56 = arith.constant 0 : index
    %c0_57 = arith.constant 0 : index
    %63 = vector.load %arg4[%c0_54, %c1_55, %c0_56, %c0_57] : memref<1x14x8x14xf32, #tpu.memory_space<vmem>>, vector<1x1x8x14xf32>
    %64 = vector.shape_cast %63 : vector<1x1x8x14xf32> to vector<8x14xf32>
    %65 = vector.shape_cast %62 : vector<8x14xf32> to vector<1x1x8x14xf32>
    tpu.vector_store %arg4[%c0_54, %c1_55, %c0_56, %c0_57], %65 {strides = array<i32>} : memref<1x14x8x14xf32, #tpu.memory_space<vmem>>, vector<1x1x8x14xf32>,
    %66 = vector.extract_strided_slice %57 {offsets = [0, 32], sizes = [8, 14], strides = [1, 1]} : vector<8x222xf32> to vector<8x14xf32>
    %c0_58 = arith.constant 0 : index
    %c2_59 = arith.constant 2 : index
    %c0_60 = arith.constant 0 : index
    %c0_61 = arith.constant 0 : index
    %67 = vector.load %arg4[%c0_58, %c2_59, %c0_60, %c0_61] : memref<1x14x8x14xf32, #tpu.memory_space<vmem>>, vector<1x1x8x14xf32>
    %68 = vector.shape_cast %67 : vector<1x1x8x14xf32> to vector<8x14xf32>
    %69 = vector.shape_cast %66 : vector<8x14xf32> to vector<1x1x8x14xf32>
    tpu.vector_store %arg4[%c0_58, %c2_59, %c0_60, %c0_61], %69 {strides = array<i32>} : memref<1x14x8x14xf32, #tpu.memory_space<vmem>>, vector<1x1x8x14xf32>,
    %70 = vector.extract_strided_slice %57 {offsets = [0, 48], sizes = [8, 14], strides = [1, 1]} : vector<8x222xf32> to vector<8x14xf32>
    %c0_62 = arith.constant 0 : index
    %c3_63 = arith.constant 3 : index
    %c0_64 = arith.constant 0 : index
    %c0_65 = arith.constant 0 : index
    %71 = vector.load %arg4[%c0_62, %c3_63, %c0_64, %c0_65] : memref<1x14x8x14xf32, #tpu.memory_space<vmem>>, vector<1x1x8x14xf32>
    %72 = vector.shape_cast %71 : vector<1x1x8x14xf32> to vector<8x14xf32>
    %73 = vector.shape_cast %70 : vector<8x14xf32> to vector<1x1x8x14xf32>
    tpu.vector_store %arg4[%c0_62, %c3_63, %c0_64, %c0_65], %73 {strides = array<i32>} : memref<1x14x8x14xf32, #tpu.memory_space<vmem>>, vector<1x1x8x14xf32>,
    %74 = vector.extract_strided_slice %57 {offsets = [0, 64], sizes = [8, 14], strides = [1, 1]} : vector<8x222xf32> to vector<8x14xf32>
    %c0_66 = arith.constant 0 : index
    %c4_67 = arith.constant 4 : index
    %c0_68 = arith.constant 0 : index
    %c0_69 = arith.constant 0 : index
    %75 = vector.load %arg4[%c0_66, %c4_67, %c0_68, %c0_69] : memref<1x14x8x14xf32, #tpu.memory_space<vmem>>, vector<1x1x8x14xf32>
    %76 = vector.shape_cast %75 : vector<1x1x8x14xf32> to vector<8x14xf32>
    %77 = vector.shape_cast %74 : vector<8x14xf32> to vector<1x1x8x14xf32>
    tpu.vector_store %arg4[%c0_66, %c4_67, %c0_68, %c0_69], %77 {strides = array<i32>} : memref<1x14x8x14xf32, #tpu.memory_space<vmem>>, vector<1x1x8x14xf32>,
    %78 = vector.extract_strided_slice %57 {offsets = [0, 80], sizes = [8, 14], strides = [1, 1]} : vector<8x222xf32> to vector<8x14xf32>
    %c0_70 = arith.constant 0 : index
    %c5_71 = arith.constant 5 : index
    %c0_72 = arith.constant 0 : index
    %c0_73 = arith.constant 0 : index
    %79 = vector.load %arg4[%c0_70, %c5_71, %c0_72, %c0_73] : memref<1x14x8x14xf32, #tpu.memory_space<vmem>>, vector<1x1x8x14xf32>
    %80 = vector.shape_cast %79 : vector<1x1x8x14xf32> to vector<8x14xf32>
    %81 = vector.shape_cast %78 : vector<8x14xf32> to vector<1x1x8x14xf32>
    tpu.vector_store %arg4[%c0_70, %c5_71, %c0_72, %c0_73], %81 {strides = array<i32>} : memref<1x14x8x14xf32, #tpu.memory_space<vmem>>, vector<1x1x8x14xf32>,
    %82 = vector.extract_strided_slice %57 {offsets = [0, 96], sizes = [8, 14], strides = [1, 1]} : vector<8x222xf32> to vector<8x14xf32>
    %c0_74 = arith.constant 0 : index
    %c6_75 = arith.constant 6 : index
    %c0_76 = arith.constant 0 : index
    %c0_77 = arith.constant 0 : index
    %83 = vector.load %arg4[%c0_74, %c6_75, %c0_76, %c0_77] : memref<1x14x8x14xf32, #tpu.memory_space<vmem>>, vector<1x1x8x14xf32>
    %84 = vector.shape_cast %83 : vector<1x1x8x14xf32> to vector<8x14xf32>
    %85 = vector.shape_cast %82 : vector<8x14xf32> to vector<1x1x8x14xf32>
    tpu.vector_store %arg4[%c0_74, %c6_75, %c0_76, %c0_77], %85 {strides = array<i32>} : memref<1x14x8x14xf32, #tpu.memory_space<vmem>>, vector<1x1x8x14xf32>,
    %86 = vector.extract_strided_slice %57 {offsets = [0, 112], sizes = [8, 14], strides = [1, 1]} : vector<8x222xf32> to vector<8x14xf32>
    %c0_78 = arith.constant 0 : index
    %c7_79 = arith.constant 7 : index
    %c0_80 = arith.constant 0 : index
    %c0_81 = arith.constant 0 : index
    %87 = vector.load %arg4[%c0_78, %c7_79, %c0_80, %c0_81] : memref<1x14x8x14xf32, #tpu.memory_space<vmem>>, vector<1x1x8x14xf32>
    %88 = vector.shape_cast %87 : vector<1x1x8x14xf32> to vector<8x14xf32>
    %89 = vector.shape_cast %86 : vector<8x14xf32> to vector<1x1x8x14xf32>
    tpu.vector_store %arg4[%c0_78, %c7_79, %c0_80, %c0_81], %89 {strides = array<i32>} : memref<1x14x8x14xf32, #tpu.memory_space<vmem>>, vector<1x1x8x14xf32>,
    %90 = vector.extract_strided_slice %57 {offsets = [0, 128], sizes = [8, 14], strides = [1, 1]} : vector<8x222xf32> to vector<8x14xf32>
    %c0_82 = arith.constant 0 : index
    %c8_83 = arith.constant 8 : index
    %c0_84 = arith.constant 0 : index
    %c0_85 = arith.constant 0 : index
    %91 = vector.load %arg4[%c0_82, %c8_83, %c0_84, %c0_85] : memref<1x14x8x14xf32, #tpu.memory_space<vmem>>, vector<1x1x8x14xf32>
    %92 = vector.shape_cast %91 : vector<1x1x8x14xf32> to vector<8x14xf32>
    %93 = vector.shape_cast %90 : vector<8x14xf32> to vector<1x1x8x14xf32>
    tpu.vector_store %arg4[%c0_82, %c8_83, %c0_84, %c0_85], %93 {strides = array<i32>} : memref<1x14x8x14xf32, #tpu.memory_space<vmem>>, vector<1x1x8x14xf32>,
    %94 = vector.extract_strided_slice %57 {offsets = [0, 144], sizes = [8, 14], strides = [1, 1]} : vector<8x222xf32> to vector<8x14xf32>
    %c0_86 = arith.constant 0 : index
    %c9 = arith.constant 9 : index
    %c0_87 = arith.constant 0 : index
    %c0_88 = arith.constant 0 : index
    %95 = vector.load %arg4[%c0_86, %c9, %c0_87, %c0_88] : memref<1x14x8x14xf32, #tpu.memory_space<vmem>>, vector<1x1x8x14xf32>
    %96 = vector.shape_cast %95 : vector<1x1x8x14xf32> to vector<8x14xf32>
    %97 = vector.shape_cast %94 : vector<8x14xf32> to vector<1x1x8x14xf32>
    tpu.vector_store %arg4[%c0_86, %c9, %c0_87, %c0_88], %97 {strides = array<i32>} : memref<1x14x8x14xf32, #tpu.memory_space<vmem>>, vector<1x1x8x14xf32>,
    %98 = vector.extract_strided_slice %57 {offsets = [0, 160], sizes = [8, 14], strides = [1, 1]} : vector<8x222xf32> to vector<8x14xf32>
    %c0_89 = arith.constant 0 : index
    %c10 = arith.constant 10 : index
    %c0_90 = arith.constant 0 : index
    %c0_91 = arith.constant 0 : index
    %99 = vector.load %arg4[%c0_89, %c10, %c0_90, %c0_91] : memref<1x14x8x14xf32, #tpu.memory_space<vmem>>, vector<1x1x8x14xf32>
    %100 = vector.shape_cast %99 : vector<1x1x8x14xf32> to vector<8x14xf32>
    %101 = vector.shape_cast %98 : vector<8x14xf32> to vector<1x1x8x14xf32>
    tpu.vector_store %arg4[%c0_89, %c10, %c0_90, %c0_91], %101 {strides = array<i32>} : memref<1x14x8x14xf32, #tpu.memory_space<vmem>>, vector<1x1x8x14xf32>,
    %102 = vector.extract_strided_slice %57 {offsets = [0, 176], sizes = [8, 14], strides = [1, 1]} : vector<8x222xf32> to vector<8x14xf32>
    %c0_92 = arith.constant 0 : index
    %c11 = arith.constant 11 : index
    %c0_93 = arith.constant 0 : index
    %c0_94 = arith.constant 0 : index
    %103 = vector.load %arg4[%c0_92, %c11, %c0_93, %c0_94] : memref<1x14x8x14xf32, #tpu.memory_space<vmem>>, vector<1x1x8x14xf32>
    %104 = vector.shape_cast %103 : vector<1x1x8x14xf32> to vector<8x14xf32>
    %105 = vector.shape_cast %102 : vector<8x14xf32> to vector<1x1x8x14xf32>
    tpu.vector_store %arg4[%c0_92, %c11, %c0_93, %c0_94], %105 {strides = array<i32>} : memref<1x14x8x14xf32, #tpu.memory_space<vmem>>, vector<1x1x8x14xf32>,
    %106 = vector.extract_strided_slice %57 {offsets = [0, 192], sizes = [8, 14], strides = [1, 1]} : vector<8x222xf32> to vector<8x14xf32>
    %c0_95 = arith.constant 0 : index
    %c12 = arith.constant 12 : index
    %c0_96 = arith.constant 0 : index
    %c0_97 = arith.constant 0 : index
    %107 = vector.load %arg4[%c0_95, %c12, %c0_96, %c0_97] : memref<1x14x8x14xf32, #tpu.memory_space<vmem>>, vector<1x1x8x14xf32>
    %108 = vector.shape_cast %107 : vector<1x1x8x14xf32> to vector<8x14xf32>
    %109 = vector.shape_cast %106 : vector<8x14xf32> to vector<1x1x8x14xf32>
    tpu.vector_store %arg4[%c0_95, %c12, %c0_96, %c0_97], %109 {strides = array<i32>} : memref<1x14x8x14xf32, #tpu.memory_space<vmem>>, vector<1x1x8x14xf32>,
    %110 = vector.extract_strided_slice %57 {offsets = [0, 208], sizes = [8, 14], strides = [1, 1]} : vector<8x222xf32> to vector<8x14xf32>
    %c0_98 = arith.constant 0 : index
    %c13 = arith.constant 13 : index
    %c0_99 = arith.constant 0 : index
    %c0_100 = arith.constant 0 : index
    %111 = vector.load %arg4[%c0_98, %c13, %c0_99, %c0_100] : memref<1x14x8x14xf32, #tpu.memory_space<vmem>>, vector<1x1x8x14xf32>
    %112 = vector.shape_cast %111 : vector<1x1x8x14xf32> to vector<8x14xf32>
    %113 = vector.shape_cast %110 : vector<8x14xf32> to vector<1x1x8x14xf32>
    tpu.vector_store %arg4[%c0_98, %c13, %c0_99, %c0_100], %113 {strides = array<i32>} : memref<1x14x8x14xf32, #tpu.memory_space<vmem>>, vector<1x1x8x14xf32>,
    return
  }
  func.func @transform_0(%arg0: i32) -> (i32, i32, i32) {
    %c0_i32 = arith.constant 0 : i32
    %c0_i32_0 = arith.constant 0 : i32
    %c0_i32_1 = arith.constant 0 : i32
    return %arg0, %c0_i32, %c0_i32_0 : i32, i32, i32
  }
  func.func @transform_1(%arg0: i32) -> (i32, i32, i32) {
    %c0_i32 = arith.constant 0 : i32
    %c0_i32_0 = arith.constant 0 : i32
    %c0_i32_1 = arith.constant 0 : i32
    %c0_i32_2 = arith.constant 0 : i32
    return %c0_i32, %c0_i32_0, %c0_i32_1 : i32, i32, i32
  }
  func.func @transform_2(%arg0: i32) -> (i32, i32) {
    %c0_i32 = arith.constant 0 : i32
    %c0_i32_0 = arith.constant 0 : i32
    %c0_i32_1 = arith.constant 0 : i32
    return %c0_i32, %c0_i32_0 : i32, i32
  }
  func.func @transform_3(%arg0: i32) -> (i32, i32, i32, i32) {
    %c0_i32 = arith.constant 0 : i32
    %c0_i32_0 = arith.constant 0 : i32
    %c0_i32_1 = arith.constant 0 : i32
    %c0_i32_2 = arith.constant 0 : i32
    return %arg0, %c0_i32, %c0_i32_0, %c0_i32_1 : i32, i32, i32, i32
  }
}

</mosaic_0001>

<bundles_post_ra>
// kernel: concat_conv2d.1
= control target key start
LH: loop header
LB: loop body
LE: loop exit
PB: predicated region body
PF: predicated region fallthrough
CT: control target
= control target key end

     0   :  { %8 = vsyncpa [#allocation3], 0  ;;  %s1288_s0 = inlined_call_operand.vmem [shape: f32[2,4,256], index: 0, kind: input, shape index: {}]   ;;  %s1289_s1 = inlined_call_operand.vmem [shape: f32[9,8,4], index: 1, kind: input, shape index: {}]   ;;  %s1290_s2 = inlined_call_operand.vmem [shape: f32[8,1], index: 2, kind: input, shape index: {}]   ;;  %s1291_s3 = inlined_call_operand.hbm [shape: f32[2,14,8,14], index: 3, kind: output, shape index: {}]  }
   0x1   :  { %10 = vsyncpa [#allocation3 + $0x1], 0  ;;  %s1094_s12 = smov 0   ;;  %s1096_s13 = smov 0  }
   0x2   :  { %s1098_s14 = smov 0   ;;  %s1100_s15 = smov 0  }
   0x3 LB: > { %s1115_s16 = sadd.s32 4294967295, %s1056_s15   ;;  %s868_s17 = sadd.s32 4294967294, %s1056_s15   ;;  %s1056_s15 = sphi %s1100_s15, %s1297_s15   ;;  %s1052_s14 = sphi %s1098_s14, %s1296_s14   ;;  %s1048_s13 = sphi %s1096_s13, %s1295_s13   ;;  %s1044_s12 = sphi %s1094_s12, %s1294_s12  }
   0x4   : > { %s1119_s18 = sadd.s32 1, %s1056_s15   ;;  %s91_s19 = sadd.s32 1, %s1052_s14 }
   0x5   : > { %s88_s20 = ssub.s32 %s1056_s15, %s1119_s18  ;;  %p101_p0 = scmp.ne.s32.totalorder %s1052_s14, %s1048_s13 }
   0x6   : > { %p89_p1 = scmp.eq.s32.totalorder %s88_s20, 0  ;;  %p102_p2 = scmp.eq.s32.totalorder %s1115_s16, 1 }
   0x7   : > { %p107_p3 = scmp.ne.s32.totalorder %s1048_s13, %s1044_s12  ;;  %p108_p4 = scmp.eq.s32.totalorder %s868_s17, 1 }
   0x8   : > { %s1130_s21 = scalar_select %p89_p1, %s1052_s14, %s91_s19  }
   0x9   : > { %p1132_p5 = por %p102_p2, %p101_p0  ;;  %p1136_p6 = por %p108_p4, %p107_p3 }
   0xa   : > { %p871_p7 = scmp.ge.s32.totalorder %s1056_s15, 1  ;;  %p140_p8 = scmp.lt.s32.totalorder %s1056_s15, 3 }
   0xc   : > { %p141_p9 = pnand %p871_p7, %p140_p8 }
   0xd   : > { %p164_p10 = scmp.lt.s32.totalorder (!%p141_p9), %s1115_s16, 1  ;;  %s1058_s29 = smov (!%p141_p9), 127  }
   0xe   : > { %144 = sbr.rel (%p141_p9) target bundleno = 486 (0x1e6), region = 32  ;;  %s1059_s30 = smov (!%p141_p9), 126  }
   0xf   : > { %s1060_s4 = smov (!%p141_p9), 112   ;;  %s1061_s5 = smov (!%p141_p9), 111  }
  0x10   : > { %s1062_s6 = smov (!%p141_p9), 110   ;;  %s1063_s7 = smov (!%p141_p9), 96  }
  0x11   : > { %s1064_s8 = smov (!%p141_p9), 95   ;;  %s1065_s9 = smov (!%p141_p9), 94  }
  0x12   : > { %s161_s20 = sand.u32 (!%p141_p9), 1, %s1048_s13   ;;  %s1067_s26 = smov (!%p141_p9), 80  }
  0x13   : > { %s165_s24 = scalar_select %p164_p10, %s1115_s16, 1  ;;  %vm188_vm0 = vcmask 1043456   ;;  %vm184_vm1 = vcmask 31744   ;;  %v171_v19 = vld [vmem:[%s1289_s1] sm:$0xff]  ;;  %vm182_vm2 = vcmask 1039360   ;;  %v874_v22 = vld [vmem:[%s1289_s1 + $0x8] sm:$0xff] }
  0x14   : > { %vm356_vm3 = vcmask 916480   ;;  %v888_v26 = vld [vmem:[%s1289_s1 + $0x18] sm:$0xff]  ;;  %vm294_vm4 = vcmask 1031168   ;;  %v883_v30 = vld [vmem:[%s1289_s1 + $0x10] sm:$0xff]  ;;  %vm418_vm5 = vcmask 908288   ;;  %v893_v33 = vld [vmem:[%s1289_s1 + $0x20] sm:$0xff] }
  0x15   : > { %s934_s25 = sshll.u32 %s165_s24, 3  ;;  %v169_v38 = vld [vmem:[%s1290_s2] sm:$0xff]  ;;  %v1066_v39 = vmov 0   ;;  %vm480_vm6 = vcmask 900096   ;;  %v898_v40 = vld [vmem:[%s1289_s1 + $0x28] sm:$0xff]  ;;  %v903_v42 = vld [vmem:[%s1289_s1 + $0x30] sm:$0xff] }
  0x16   : > { %s168_s28 = scalar_lea.vmem %s1288_s0, %s934_s25  ;;  %992 = vset.pattern.permute.xlu1 %v1066_v39  ;;  %993 = vset.pattern.permute.xlu0 %v1066_v39  ;;  %vm542_vm7 = vcmask 785408   ;;  %vm604_vm8 = vcmask 777216   ;;  %v908_v46 = vld [vmem:[%s1289_s1 + $0x38] sm:$0xff]  ;;  %vm666_vm9 = vcmask 769024   ;;  %v913_v51 = vld [vmem:[%s1289_s1 + $0x40] sm:$0xff]  ;;  %s935_s24 = smul.u32 112, %s161_s20 }
  0x17   : > { %v170_v0 = vld [vmem:[%s168_s28] sm:$0xff]  ;;  %vm724_vm10 = vcmask 113664   ;;  %s1068_s27 = smov 64   ;;  %s1069_s28 = smov 32  }
  0x18   : > { %175 = vst [vmem:[#allocation1] ss:$2 sm:$0xff] %v170_v0  ;;  %s1220_s25 = scalar_lea.vmem [#allocation2], %s935_s24  ;;  %s1014_s24 = scalar_lea.hbm %s1291_s3, 224 }
  0x1f   : > { %v176_v1 = vld.sshfl [vmem:[#allocation1] sm:$0xff pattern:$0x75316420]  ;;  %v177_v2 = vld.sshfl [vmem:[#allocation1 + $0x8] sm:$0xff pattern:$0x75316420] }
  0x20   : > { %178 = vrot.lane.b32.xlu0 %v176_v1, %s1058_s29  ;;  %233 = vst [vmem:[#allocation1] ss:$2 sm:$0xff] %v170_v0 }
  0x27   : > { %v234_v3 = vld.sshfl [vmem:[#allocation1] sm:$0xff pattern:$0x75316420]  ;;  %v235_v4 = vld.sshfl [vmem:[#allocation1 + $0x8] sm:$0xff pattern:$0x75316420] }
  0x28   : > { %287 = vst [vmem:[#allocation1] ss:$2 sm:$0xff] %v170_v0  ;;  %180 = vrot.lane.b32.xlu0 %v177_v2, %s1058_s29  ;;  %881 = vmatpush.msk.msra.mxu3 %vm188_vm0, %v235_v4  ;;  %s1070_s29 = smov 48  }
  0x29   : > { %879 = vmatpush.msk.msra.mxu2 %vm188_vm0, %v234_v3  ;;  %882 = vmatmul.msk.f32.vlgmr.msra.gmra.mxu3 %vm184_vm1, %v171_v19 }
  0x2a   : > { %880 = vmatmul.msk.f32.vlgmr.msra.gmra.mxu2 %vm184_vm1, %v171_v19 }
  0x2f   : > { %v288_v5 = vld.sshfl [vmem:[#allocation1] sm:$0xff pattern:$0x75316420]  ;;  %v289_v6 = vld.sshfl [vmem:[#allocation1 + $0x8] sm:$0xff pattern:$0x75316420] }
  0x30   : > { %290 = vrot.lane.b32.xlu1 %v288_v5, %s1059_s30  ;;  %349 = vst [vmem:[#allocation1] ss:$2 sm:$0xff] %v170_v0 }
  0x37   : > { %v350_v7 = vld.sshfl [vmem:[#allocation1] sm:$0xff pattern:$0x75316420]  ;;  %v351_v8 = vld.sshfl [vmem:[#allocation1 + $0x8] sm:$0xff pattern:$0x75316420] }
  0x38   : > { %292 = vrot.lane.b32.xlu1 %v289_v6, %s1059_s30  ;;  %411 = vst [vmem:[#allocation1] ss:$2 sm:$0xff] %v170_v0  ;;  %352 = vrot.lane.b32.xlu2 %v350_v7, %s1060_s4  ;;  %s1071_s30 = smov 16  }
  0x3f   : > { %v412_v9 = vld.sshfl [vmem:[#allocation1] sm:$0xff pattern:$0x75316420]  ;;  %v413_v10 = vld.sshfl [vmem:[#allocation1 + $0x8] sm:$0xff pattern:$0x75316420] }
  0x40   : > { %414 = vrot.lane.b32.xlu0 %v412_v9, %s1061_s5  ;;  %416 = vrot.lane.b32.xlu1 %v413_v10, %s1061_s5  ;;  %473 = vst [vmem:[#allocation1] ss:$2 sm:$0xff] %v170_v0 }
  0x41   : > { %354 = vrot.lane.b32.xlu2 %v351_v8, %s1060_s4 }
  0x47   : > { %v475_v11 = vld.sshfl [vmem:[#allocation1 + $0x8] sm:$0xff pattern:$0x75316420]  ;;  %v474_v12 = vld.sshfl [vmem:[#allocation1] sm:$0xff pattern:$0x75316420] }
  0x48   : > { %478 = vrot.lane.b32.xlu0 %v475_v11, %s1062_s6  ;;  %535 = vst [vmem:[#allocation1] ss:$2 sm:$0xff] %v170_v0 }
  0x49   : > { %476 = vrot.lane.b32.xlu2 %v474_v12, %s1062_s6 }
  0x4f   : > { %v536_v13 = vld.sshfl [vmem:[#allocation1] sm:$0xff pattern:$0x75316420]  ;;  %v537_v14 = vld.sshfl [vmem:[#allocation1 + $0x8] sm:$0xff pattern:$0x75316420] }
  0x50   : > { %538 = vrot.lane.b32.xlu1 %v536_v13, %s1063_s7  ;;  %597 = vst [vmem:[#allocation1] ss:$2 sm:$0xff] %v170_v0 }
  0x51   : > { %540 = vrot.lane.b32.xlu2 %v537_v14, %s1063_s7 }
  0x57   : > { %v599_v15 = vld.sshfl [vmem:[#allocation1 + $0x8] sm:$0xff pattern:$0x75316420]  ;;  %v598_v16 = vld.sshfl [vmem:[#allocation1] sm:$0xff pattern:$0x75316420] }
  0x58   : > { %602 = vrot.lane.b32.xlu1 %v599_v15, %s1064_s8  ;;  %600 = vrot.lane.b32.xlu0 %v598_v16, %s1064_s8  ;;  %659 = vst [vmem:[#allocation1] ss:$2 sm:$0xff] %v170_v0  ;;  %s803_s8 = sshll.u32 %s1220_s25, 4  ;;  %s804_s8 = int_to_ptr.vmem [resolvable:$true] %s803_s8 }
  0x5f   : > { %v661_v17 = vld.sshfl [vmem:[#allocation1 + $0x8] sm:$0xff pattern:$0x75316420]  ;;  %v660_v18 = vld.sshfl [vmem:[#allocation1] sm:$0xff pattern:$0x75316420] }
  0x60   : > { %664 = vrot.lane.b32.xlu0 %v661_v17, %s1065_s9  ;;  %662 = vrot.lane.b32.xlu2 %v660_v18, %s1065_s9 }
  0x61   : > { %719 = vperm.xlu1 %992, %v169_v38  }
  0x92   : > { %v179_v20 = vpop.permute.xlu0 %178  ;;  %v353_v21 = vpop.permute.xlu2 %352 }
  0x9a   : > { %v181_v23 = vpop.permute.xlu0 %180 }
  0x9b   : > { %v183_v24 = vsel %vm182_vm2, %v179_v20, %v181_v23  ;;  %877 = vmatpush.msk.msra.mxu1 %vm188_vm0, %v181_v23  ;;  %v355_v25 = vpop.permute.xlu2 %354 }
  0x9c   : > { %875 = vmatpush.msk.msra.mxu0 %vm188_vm0, %v183_v24  ;;  %878 = vmatmul.msk.f32.vlgmr.msra.gmra.mxu1 %vm184_vm1, %v874_v22  ;;  %v357_v27 = vsel %vm356_vm3, %v353_v21, %v355_v25 }
  0x9d   : > { %889 = vmatpush.msk.msrb.mxu2 %vm188_vm0, %v357_v27  ;;  %891 = vmatpush.msk.msrb.mxu3 %vm188_vm0, %v355_v25 }
  0x9e   : > { %876 = vmatmul.msk.f32.vlgmr.msra.gmra.mxu0 %vm184_vm1, %v874_v22  ;;  %892 = vmatmul.msk.f32.vlgmr.msrb.gmra.mxu3 %vm184_vm1, %v888_v26 }
  0x9f   : > { %890 = vmatmul.msk.f32.vlgmr.msrb.gmra.mxu2 %vm184_vm1, %v888_v26 }
  0xa2   : > { %v291_v28 = vpop.permute.xlu1 %290 }
  0xa3   : > { %v477_v29 = vpop.permute.xlu2 %476 }
  0xaa   : > { %v293_v31 = vpop.permute.xlu1 %292 }
  0xab   : > { %v295_v32 = vsel %vm294_vm4, %v291_v28, %v293_v31  ;;  %886 = vmatpush.msk.msrb.mxu1 %vm188_vm0, %v293_v31  ;;  %v541_v34 = vpop.permute.xlu2 %540 }
  0xac   : > { %884 = vmatpush.msk.msrb.mxu0 %vm188_vm0, %v295_v32  ;;  %887 = vmatmul.msk.f32.vlgmr.msrb.gmra.mxu1 %vm184_vm1, %v883_v30  ;;  %v280_v57 = vpop.f32.mrf.mxu3 }
  0xad   : > { %885 = vmatmul.msk.f32.vlgmr.msrb.gmra.mxu0 %vm184_vm1, %v883_v30  ;;  %v260_v56 = vpop.f32.mrf.mxu2 }
  0xb2   : > { %v415_v35 = vpop.permute.xlu0 %414  ;;  %v417_v36 = vpop.permute.xlu1 %416 }
  0xb3   : > { %v419_v37 = vsel %vm418_vm5, %v415_v35, %v417_v36  ;;  %896 = vmatpush.msk.msra.mxu1 %vm188_vm0, %v417_v36 }
  0xb4   : > { %894 = vmatpush.msk.msra.mxu0 %vm188_vm0, %v419_v37  ;;  %897 = vmatmul.msk.f32.vlgmr.msra.gmra.mxu1 %vm184_vm1, %v893_v33 }
  0xb5   : > { %906 = vmatpush.msk.msrb.mxu1 %vm188_vm0, %v541_v34  ;;  %895 = vmatmul.msk.f32.vlgmr.msra.gmra.mxu0 %vm184_vm1, %v893_v33 }
  0xba   : > { %v479_v41 = vpop.permute.xlu0 %478  ;;  %v663_v50 = vpop.permute.xlu2 %662 }
  0xbb   : > { %v481_v43 = vsel %vm480_vm6, %v477_v29, %v479_v41  ;;  %901 = vmatpush.msk.msra.mxu3 %vm188_vm0, %v479_v41 }
  0xbc   : > { %902 = vmatmul.msk.f32.vlgmr.msra.gmra.mxu3 %vm184_vm1, %v898_v40  ;;  %899 = vmatpush.msk.msra.mxu2 %vm188_vm0, %v481_v43 }
  0xbd   : > { %900 = vmatmul.msk.f32.vlgmr.msra.gmra.mxu2 %vm184_vm1, %v898_v40  ;;  %907 = vmatmul.msk.f32.vlgmr.msrb.gmra.mxu1 %vm184_vm1, %v903_v42 }
  0xc2   : > { %v539_v44 = vpop.permute.xlu1 %538 }
  0xc3   : > { %v543_v45 = vsel %vm542_vm7, %v539_v44, %v541_v34 }
  0xc4   : > { %904 = vmatpush.msk.msrb.mxu0 %vm188_vm0, %v543_v45 }
  0xc5   : > { %905 = vmatmul.msk.f32.vlgmr.msrb.gmra.mxu0 %vm184_vm1, %v903_v42 }
  0xca   : > { %v603_v47 = vpop.permute.xlu1 %602  ;;  %v601_v48 = vpop.permute.xlu0 %600 }
  0xcb   : > { %v605_v49 = vsel %vm604_vm8, %v601_v48, %v603_v47  ;;  %911 = vmatpush.msk.msrb.mxu3 %vm188_vm0, %v603_v47 }
  0xcc   : > { %909 = vmatpush.msk.msrb.mxu2 %vm188_vm0, %v605_v49  ;;  %912 = vmatmul.msk.f32.vlgmr.msrb.gmra.mxu3 %vm184_vm1, %v908_v46 }
  0xcd   : > { %910 = vmatmul.msk.f32.vlgmr.msrb.gmra.mxu2 %vm184_vm1, %v908_v46 }
  0xd2   : > { %v665_v52 = vpop.permute.xlu0 %664 }
  0xd3   : > { %v667_v53 = vsel %vm666_vm9, %v663_v50, %v665_v52  ;;  %916 = vmatpush.msk.msra.mxu1 %vm188_vm0, %v665_v52  ;;  %v720_v21 = vpop.permute.xlu1 %719 }
  0xd4   : > { %914 = vmatpush.msk.msra.mxu0 %vm188_vm0, %v667_v53  ;;  %917 = vmatmul.msk.f32.vlgmr.msra.gmra.mxu1 %vm184_vm1, %v913_v51 }
  0xd5   : > { %915 = vmatmul.msk.f32.vlgmr.msra.gmra.mxu0 %vm184_vm1, %v913_v51 }
 0x119   : > { %v230_v55 = vpop.f32.mrf.mxu1 }
 0x11a   : > { %v281_v61 = vadd.f32 %v280_v57, %v230_v55 }
 0x11b   : > { %v210_v54 = vpop.f32.mrf.mxu0 }
 0x11c   : > { %v261_v60 = vadd.f32 %v260_v56, %v210_v54 }
 0x121   : > { %v402_v63 = vpop.f32.mrf.mxu3 }
 0x122   : > { %v382_v62 = vpop.f32.mrf.mxu2 }
 0x129   : > { %v340_v59 = vpop.f32.mrf.mxu1 }
 0x12a   : > { %v320_v58 = vpop.f32.mrf.mxu0  ;;  %v344_v1 = vadd.f32 %v340_v59, %v281_v61 }
 0x12b   : > { %v343_v0 = vadd.f32 %v320_v58, %v261_v60 }
 0x12c   : > { %v406_v5 = vadd.f32 %v402_v63, %v344_v1 }
 0x12d   : > { %v405_v4 = vadd.f32 %v382_v62, %v343_v0 }
 0x131   : > { %v464_v3 = vpop.f32.mrf.mxu1 }
 0x132   : > { %v444_v2 = vpop.f32.mrf.mxu0  ;;  %v468_v8 = vadd.f32 %v464_v3, %v406_v5 }
 0x133   : > { %v467_v7 = vadd.f32 %v444_v2, %v405_v4 }
 0x13a   : > { %v588_v10 = vpop.f32.mrf.mxu1 }
 0x13f   : > { %v526_v6 = vpop.f32.mrf.mxu3 }
 0x140   : > { %v506_v9 = vpop.f32.mrf.mxu2  ;;  %v530_v11 = vadd.f32 %v526_v6, %v468_v8 }
 0x141   : > { %v529_v13 = vadd.f32 %v506_v9, %v467_v7 }
 0x142   : > { %v568_v12 = vpop.f32.mrf.mxu0  ;;  %v592_v14 = vadd.f32 %v588_v10, %v530_v11 }
 0x143   : > { %v591_v15 = vadd.f32 %v568_v12, %v529_v13 }
 0x14f   : > { %v650_v16 = vpop.f32.mrf.mxu3 }
 0x150   : > { %v654_v17 = vadd.f32 %v650_v16, %v592_v14  ;;  %v630_v18 = vpop.f32.mrf.mxu2 }
 0x151   : > { %v653_v19 = vadd.f32 %v630_v18, %v591_v15  ;;  %v712_v20 = vpop.f32.mrf.mxu1 }
 0x152   : > { %v716_v22 = vadd.f32 %v712_v20, %v654_v17  ;;  %v692_v23 = vpop.f32.mrf.mxu0 }
 0x153   : > { %v715_v24 = vadd.f32 %v692_v23, %v653_v19 }
 0x154   : > { %v723_v25 = vadd.f32 %v720_v21, %v716_v22 }
 0x155   : > { %v722_v26 = vadd.f32 %v720_v21, %v715_v24 }
 0x156   : > { %925 = vst.msk [vmem:[%s1220_s25 + $0x40] sm:$0xff] %vm724_vm10, %v723_v25  ;;  %770 = vrot.lane.b32.xlu1 %v723_v25, %s1063_s7  ;;  %765 = vrot.lane.b32.xlu0 %v723_v25, %s1060_s4 }
 0x157   : > { %725 = vst.msk [vmem:[%s1220_s25] sm:$0xff] %vm724_vm10, %v722_v26  ;;  %727 = vrot.lane.b32.xlu2 %v722_v26, %s1060_s4  ;;  %s936_s4 = smul.u32 112, %s1115_s16  ;;  %s791_s16 = scalar_lea.sflag [#allocation3], %s161_s20 }
 0x159   : > { %s802_s6 = scalar_lea.hbm %s1291_s3, %s936_s4 }
 0x15a   : > { %s805_s9 = sshll.u32 %s802_s6, 4  ;;  %s806_s9 = int_to_ptr.hbm [resolvable:$true] %s805_s9 }
 0x15b   : > { %s1008_s10 = sshra.s32 %s806_s9, 4  ;;  %s1009_s10 = int_to_ptr.hbm [resolvable:$true] %s1008_s10 }
 0x15c   : > { %s1010_s11 = scalar_lea.hbm %s1009_s10, 112  ;;  %p1015_p0 = scmp.lt.s32.totalorder %s1009_s10, %s1291_s3 }
 0x15d   : > { %p1011_p11 = scmp.ne.s32.totalorder %s1009_s10, %s1010_s11  ;;  %p1016_p1 = scmp.lt.s32.totalorder %s1014_s24, %s1010_s11 }
 0x15e   : > { %737 = vrot.lane.b32.xlu1 %v722_v26, %s1067_s26  ;;  %732 = vrot.lane.b32.xlu0 %v722_v26, %s1063_s7 }
 0x15f   : > { %742 = vrot.lane.b32.xlu2 %v722_v26, %s1068_s27  ;;  %p1012_p12 = pnand %p1011_p11, %p1132_p5  ;;  %p1017_p2 = por %p1016_p1, %p1015_p0 }
 0x161   : > { %p1013_p13 = pneg %p1012_p12 }
 0x163   : > { %p1018_p3 = pnand %p1017_p2, %p1013_p13 }
 0x166   : > { %752 = vrot.lane.b32.xlu1 %v722_v26, %s1069_s28  ;;  %747 = vrot.lane.b32.xlu0 %v722_v26, %s1070_s29 }
 0x167   : > { %757 = vrot.lane.b32.xlu2 %v722_v26, %s1071_s30 }
 0x16e   : > { %785 = vrot.lane.b32.xlu1 %v723_v25, %s1070_s29  ;;  %780 = vrot.lane.b32.xlu0 %v723_v25, %s1068_s27 }
 0x16f   : > { %775 = vrot.lane.b32.xlu2 %v723_v25, %s1067_s26 }
 0x1b1   : > { %v728_v27 = vpop.permute.xlu2 %727 }
 0x1b2   : > { %918 = vst.msk [vmem:[%s1220_s25 + $0x8] sm:$0xff] %vm724_vm10, %v728_v27 }
 0x1b9   : > { %v743_v28 = vpop.permute.xlu2 %742 }
 0x1ba   : > { %921 = vst.msk [vmem:[%s1220_s25 + $0x20] sm:$0xff] %vm724_vm10, %v743_v28 }
 0x1c1   : > { %v758_v29 = vpop.permute.xlu2 %757 }
 0x1c2   : > { %924 = vst.msk [vmem:[%s1220_s25 + $0x38] sm:$0xff] %vm724_vm10, %v758_v29 }
 0x1c8   : > { %v771_v30 = vpop.permute.xlu1 %770  ;;  %v766_v31 = vpop.permute.xlu0 %765 }
 0x1c9   : > { %927 = vst.msk [vmem:[%s1220_s25 + $0x50] sm:$0xff] %vm724_vm10, %v771_v30  ;;  %v776_v32 = vpop.permute.xlu2 %775 }
 0x1ca   : > { %926 = vst.msk [vmem:[%s1220_s25 + $0x48] sm:$0xff] %vm724_vm10, %v766_v31 }
 0x1cb   : > { %928 = vst.msk [vmem:[%s1220_s25 + $0x58] sm:$0xff] %vm724_vm10, %v776_v32 }
 0x1d0   : > { %v738_v33 = vpop.permute.xlu1 %737  ;;  %v733_v34 = vpop.permute.xlu0 %732 }
 0x1d1   : > { %920 = vst.msk [vmem:[%s1220_s25 + $0x18] sm:$0xff] %vm724_vm10, %v738_v33 }
 0x1d2   : > { %919 = vst.msk [vmem:[%s1220_s25 + $0x10] sm:$0xff] %vm724_vm10, %v733_v34 }
 0x1d8   : > { %v753_v35 = vpop.permute.xlu1 %752  ;;  %v748_v36 = vpop.permute.xlu0 %747 }
 0x1d9   : > { %923 = vst.msk [vmem:[%s1220_s25 + $0x30] sm:$0xff] %vm724_vm10, %v753_v35 }
 0x1da   : > { %922 = vst.msk [vmem:[%s1220_s25 + $0x28] sm:$0xff] %vm724_vm10, %v748_v36 }
 0x1e0   : > { %v786_v37 = vpop.permute.xlu1 %785  ;;  %v781_v38 = vpop.permute.xlu0 %780 }
 0x1e1   : > { %930 = vst.msk [vmem:[%s1220_s25 + $0x68] sm:$0xff] %vm724_vm10, %v786_v37 }
 0x1e2   : > { %929 = vst.msk [vmem:[%s1220_s25 + $0x60] sm:$0xff] %vm724_vm10, %v781_v38 }
 0x1e3   : > { %1021 = shalt.err (!%p1018_p3)
}
 0x1e4   : > { %s1072_s20 = smov 128   ;;  %s1073_s25 = smov 8  }
 0x1e5   : > { %937 = dma.vmem_to_hbm [thread:$0]  (%p1132_p5), %s804_s8, 1792, %s806_s9, %s791_s16, %s1072_s20, %s1072_s20, %s1073_s25  }
 0x1e6 PF: > { %p943_p4 = scmp.ge.s32.totalorder %s1056_s15, 2  ;;  %s820_s28 = sand.u32 1, %s1044_s12  }
 0x1e7   : > { %s821_s29 = scalar_lea.sflag [#allocation3], %s820_s28 }
 0x1e8   : > { %p940_p7 = pnand %p943_p4, %p1136_p6 }
 0x1ea   : > { %p941_p8 = pneg %p940_p7 }
 0x1ec   : > { %1039 = dma.done.wait (%p941_p8), %s821_s29, 1792  }
 0x1ed   : > { %1041 = vsyncadd (%p941_p8), %s821_s29, 4294965504  ;;  %p13_p9 = scmp.ge.s32.totalorder %s1119_s18, 4   ;;  %s1294_s12 = smov %s1048_s13 }
 0x1ee   : > { %s1295_s13 = smov %s1052_s14  ;;  %s1296_s14 = smov %s1130_s21 }
 0x1ef   : > { %s1297_s15 = smov %s1119_s18  ;;  %15 = sbr.rel (!%p13_p9) target bundleno = 3 (0x3), region = 88 }
 0x1f4   :  { %827 = vsyncpa [#allocation3], 1 }
 0x1f5   :  { %829 = vsyncpa [#allocation3 + $0x1], 1 }

</bundles_post_ra>
